<compile_context>
chip_gen: v7x
topology: tpu7x:2x2x1
jax: 0.10.0
libtpu: 0.0.40
codegen_flags: <defaults>
</compile_context>

<pallas_src>
import math

import jax
import jax.numpy as jnp
from jax.experimental import pallas as pl
from jax.experimental.pallas import tpu as pltpu


def _round_up(x, m):
    return ((x + m - 1) // m) * m


def _logistic_kernel(x_ref, w_ref, b_ref, o_ref):
    # f32 x tile  @  f32 (K, 128) resident W  ->  f32 MXU accumulate, + bias,
    # lane-dense (TB, 128) unmasked store.
    acc = jnp.dot(x_ref[...], w_ref[...], preferred_element_type=jnp.float32)
    o_ref[...] = (acc + b_ref[...]).astype(o_ref.dtype)


def prepare_params(weights, bias):
    """One-time (per parameter update) lane-padding of W/bias: 10 -> 128 output lanes.

    Returns (w_p: (784, 128) f32, b_p: (1, 128) f32). Columns >= 10 are exactly zero.
    """
    K, N = weights.shape
    Np = _round_up(max(N, 128), 128)
    w_p = jnp.zeros((K, Np), jnp.float32).at[:, :N].set(weights.astype(jnp.float32))
    b_p = jnp.zeros((1, Np), jnp.float32).at[0, :N].set(bias.astype(jnp.float32))
    return w_p, b_p


def mnist_logistic_forward_padded(x, w_p, b_p):
    """x: (B, 784) f32, w_p: (784, 128) f32, b_p: (1, 128) f32 -> (Bp, 128) f32 logits.

    Columns 10..127 are zero (+0 bias); rows >= B (batch padding) contain bias only.
    Consumers that can handle the padding should use this directly (no slice pass).
    """
    B, K = x.shape
    Kw, Np = w_p.shape
    assert Kw == K, (Kw, K)

    # Batch tile: aim for >= 2 grid steps (v7x two-TC streaming), multiple of 8
    # sublanes, capped at 1024 rows (double-buffered f32 x tile ~6 MiB, fits the
    # 16 MiB v5e default scoped VMEM with room for out/W buffers).
    TB = min(_round_up(max(pl.cdiv(B, 2), 8), 8), 1024)
    Bp = _round_up(B, TB)
    if Bp != B:
        x = jnp.zeros((Bp, K), x.dtype).at[:B].set(x)

    grid = (Bp // TB,)
    return pl.pallas_call(
        _logistic_kernel,
        out_shape=jax.ShapeDtypeStruct((Bp, Np), jnp.float32),
        grid_spec=pltpu.PrefetchScalarGridSpec(
            num_scalar_prefetch=0,
            grid=grid,
            in_specs=[
                # Raw x tile, pipelined over batch; last dim == full 784 (no padding).
                pl.BlockSpec((TB, K), lambda i: (i, 0)),
                # W and bias resident across the whole grid.
                pl.BlockSpec((K, Np), lambda i: (0, 0)),
                pl.BlockSpec((1, Np), lambda i: (0, 0)),
            ],
            out_specs=pl.BlockSpec((TB, Np), lambda i: (i, 0)),
        ),
        compiler_params=pltpu.CompilerParams(
            dimension_semantics=("parallel",),
        ),
        cost_estimate=pl.CostEstimate(
            flops=2 * Bp * K * Np,
            transcendentals=0,
            # Real HBM traffic: unpadded-K x read, resident W/bias read once,
            # padded f32 logit writeback.
            bytes_accessed=(Bp * K * 4 + K * Np * 4 + Np * 4 + Bp * Np * 4),
        ),
    )(x, w_p, b_p)


def mnist_logistic_forward(x, w_p, b_p, n_out=10):
    """Semantic parity with the nn.Module: returns (B, n_out) f32 logits."""
    B = x.shape[0]
    out_padded = mnist_logistic_forward_padded(x, w_p, b_p)
    return out_padded[:B, :n_out]


if __name__ == "__main__":
    key = jax.random.PRNGKey(0)
    kx, kw = jax.random.split(key)

    bs = 64          # batch size, matches `bs = 64` in the source module
    in_dim = 784     # 28*28 MNIST pixels
    out_dim = 10     # logits

    # Deterministic init matching nn.Parameter(torch.randn(784,10)/sqrt(784)), bias zeros.
    weights = (jax.random.normal(kw, (in_dim, out_dim), dtype=jnp.float32)
               / math.sqrt(in_dim))
    bias = jnp.zeros((out_dim,), dtype=jnp.float32)

    xb = jax.random.normal(kx, (bs, in_dim), dtype=jnp.float32)

    # One-time parameter padding (hoisted out of the per-call path).
    w_p, b_p = prepare_params(weights, bias)

    out = mnist_logistic_forward(xb, w_p, b_p, n_out=out_dim)
    out = jax.block_until_ready(out)

    # Correctness check against plain-JAX f32 reference.
    ref = xb @ weights + bias
    assert out.shape == (bs, out_dim)
    assert jnp.allclose(out, ref, atol=2e-2, rtol=2e-2), (
        float(jnp.max(jnp.abs(out - ref))))
    print("KERNEL_OK")
</pallas_src>

<mosaic_0001>
module attributes {stable_mosaic.version = 11 : i64} {
  func.func @_logistic_kernel(%arg0: i32, %arg1: memref<32x784xf32, #tpu.memory_space<vmem>>, %arg2: memref<784x128xf32, #tpu.memory_space<vmem>>, %arg3: memref<1x128xf32, #tpu.memory_space<vmem>>, %arg4: memref<32x128xf32, #tpu.memory_space<vmem>>) attributes {dimension_semantics = [#tpu.dimension_semantics<parallel>], iteration_bounds = array<i64: 2>, scalar_prefetch = 0 : i64, scratch_operands = 0 : i64, tpu.core_type = #tpu.core_type<tc>, window_params = [{transform_indices = @transform_0, window_bounds = array<i64: 32, 784>}, {pipeline_mode = #tpu.pipeline_mode<synchronous>, transform_indices = @transform_1, window_bounds = array<i64: 784, 128>}, {pipeline_mode = #tpu.pipeline_mode<synchronous>, transform_indices = @transform_2, window_bounds = array<i64: 1, 128>}, {transform_indices = @transform_3, window_bounds = array<i64: 32, 128>}]} {
    %c0 = arith.constant 0 : index
    %c0_0 = arith.constant 0 : index
    %0 = vector.load %arg1[%c0, %c0_0] : memref<32x784xf32, #tpu.memory_space<vmem>>, vector<32x784xf32>
    %c0_1 = arith.constant 0 : index
    %c0_2 = arith.constant 0 : index
    %1 = vector.load %arg2[%c0_1, %c0_2] : memref<784x128xf32, #tpu.memory_space<vmem>>, vector<784x128xf32>
    %cst = arith.constant dense<0.000000e+00> : vector<32x128xf32>
    %2 = tpu.matmul %0, %1, %cst {dimension_numbers = #tpu.dot_dimension_numbers<[1], [0], [0], [1], [0, 0, 1, 1], [], []>} : vector<32x784xf32>, vector<784x128xf32>, vector<32x128xf32> -> vector<32x128xf32>
    %c0_3 = arith.constant 0 : index
    %c0_4 = arith.constant 0 : index
    %3 = vector.load %arg3[%c0_3, %c0_4] : memref<1x128xf32, #tpu.memory_space<vmem>>, vector<1x128xf32>
    %4 = vector.broadcast %3 : vector<1x128xf32> to vector<32x128xf32>
    %5 = arith.addf %2, %4 : vector<32x128xf32>
    %c0_5 = arith.constant 0 : index
    %c0_6 = arith.constant 0 : index
    %6 = vector.load %arg4[%c0_5, %c0_6] : memref<32x128xf32, #tpu.memory_space<vmem>>, vector<32x128xf32>
    tpu.vector_store %arg4[%c0_5, %c0_6], %5 {strides = array<i32>} : memref<32x128xf32, #tpu.memory_space<vmem>>, vector<32x128xf32>,
    return
  }
  func.func @transform_0(%arg0: i32) -> (i32, i32) {
    %c0_i32 = arith.constant 0 : i32
    %c0_i32_0 = arith.constant 0 : i32
    return %arg0, %c0_i32 : i32, i32
  }
  func.func @transform_1(%arg0: i32) -> (i32, i32) {
    %c0_i32 = arith.constant 0 : i32
    %c0_i32_0 = arith.constant 0 : i32
    %c0_i32_1 = arith.constant 0 : i32
    return %c0_i32, %c0_i32_0 : i32, i32
  }
  func.func @transform_2(%arg0: i32) -> (i32, i32) {
    %c0_i32 = arith.constant 0 : i32
    %c0_i32_0 = arith.constant 0 : i32
    %c0_i32_1 = arith.constant 0 : i32
    return %c0_i32, %c0_i32_0 : i32, i32
  }
  func.func @transform_3(%arg0: i32) -> (i32, i32) {
    %c0_i32 = arith.constant 0 : i32
    %c0_i32_0 = arith.constant 0 : i32
    return %arg0, %c0_i32 : i32, i32
  }
}

</mosaic_0001>

<bundles_post_ra>
// kernel: tpu_custom_call.1
= control target key start
LH: loop header
LB: loop body
LE: loop exit
PB: predicated region body
PF: predicated region fallthrough
CT: control target
= control target key end

     0   :  { %8 = vsyncpa [#allocation3], 0  ;;  %s1543_s0 = inlined_call_operand.hbm [shape: f32[64,784], index: 0, kind: input, shape index: {}]   ;;  %s1544_s1 = inlined_call_operand.hbm [shape: f32[784,128], index: 1, kind: input, shape index: {}]   ;;  %s1545_s2 = inlined_call_operand.vmem [shape: f32[1,128], index: 2, kind: input, shape index: {}]   ;;  %s1546_s3 = inlined_call_operand.hbm [shape: f32[64,128], index: 3, kind: output, shape index: {}]  }
   0x1   :  { %10 = vsyncpa [#allocation3 + $0x1], 0 }
   0x2   :  { %11 = vsyncpa [#allocation6], 0 }
   0x3   :  { %12 = vsyncpa [#allocation4], 0 }
   0x4   :  { %14 = vsyncpa [#allocation4 + $0x1], 0  ;;  %s1304_s12 = smov 0   ;;  %s1306_s13 = smov 0  }
   0x5   :  { %s1308_s14 = smov 0   ;;  %s1310_s15 = smov 0  }
   0x6 LB: > { %s1325_s16 = sadd.s32 4294967295, %s1273_s15   ;;  %s794_s17 = sadd.s32 4294967294, %s1273_s15   ;;  %s1273_s15 = sphi %s1310_s15, %s1566_s15   ;;  %s1269_s14 = sphi %s1308_s14, %s1565_s14   ;;  %s1265_s13 = sphi %s1306_s13, %s1564_s13   ;;  %s1261_s12 = sphi %s1304_s12, %s1563_s12  }
   0x7   : > { %p40_p0 = scmp.ne.s32.totalorder %s1265_s13, %s1261_s12  ;;  %p1547_p1 = scmp.eq.s32.totalorder %s1325_s16, 0 }
   0x8   : > { %p112_p3 = scmp.eq.s32.totalorder %s794_s17, 1  ;;  %p795_p5 = scmp.ge.s32.totalorder %s1273_s15, 1 }
   0x9   : > { %p1334_p4 = por %p1547_p1, %p40_p0  ;;  %p119_p7 = scmp.lt.s32.totalorder %s1273_s15, 3 }
   0xa   : > { %p1339_p6 = por %p112_p3, %p40_p0  ;;  %s1275_s21 = smov [#allocation5]  }
   0xb   : > { %s1550_s18 = scalar_select %p1334_p4, 1, 0 }
   0xc   : > { %s1551_s19 = scalar_select %p1339_p6, 1, 0 }
   0xd   : > { %p1344_p8 = pnand %p795_p5, %p119_p7  ;;  %s131_s22 = sshll.u32 %s1275_s21, 4  ;;  %s1348_s22 = int_to_ptr.vmem [resolvable:$true] %s131_s22 }
   0xe   : > { %s1360_s24 = sadd.s32 1, %s1273_s15   ;;  %s27_s25 = sadd.s32 1, %s1269_s14 }
   0xf   : > { %s1552_s20 = scalar_select %p1344_p8, 1, 0 }
  0x10   : > { %p1090_p9 = pneg %p1344_p8  ;;  %s24_s26 = ssub.s32 %s1273_s15, %s1360_s24 }
  0x11   : > { %s1145_s29 = scalar_lea.hbm %s1544_s1, 12544 }
  0x12   : > { %p1355_p11 = pnand %p1090_p9, %p1547_p1  ;;  %p1146_p12 = scmp.ne.s32.totalorder %s1544_s1, %s1145_s29 }
  0x13   : > { %p1152_p5 = scmp.lt.u32.totalorder %s1145_s29, %s1544_s1 }
  0x14   : > { %p1147_p13 = pneg %p1355_p11 }
  0x16   : > { %p1148_p0 = pnand %p1147_p13, %p1146_p12 }
  0x18   : > { %p1149_p3 = pneg %p1148_p0 }
  0x1a   : > { %p1154_p7 = pnand %p1152_p5, %p1149_p3 }
  0x1c   : > { %1157 = shalt.err (!%p1154_p7)
}
  0x1d   : > { %s1158_s7 = scalar_lea.vmem %s1348_s22, 12544  ;;  %p1166_p2 = scmp.lt.s32.totalorder %s1348_s22, %s1348_s22 }
  0x1e   : > { %p1159_p9 = scmp.ne.s32.totalorder %s1348_s22, %s1158_s7  ;;  %p1167_p6 = scmp.lt.s32.totalorder %s1158_s7, %s1158_s7 }
  0x20   : > { %p1161_p10 = pnand %p1159_p9, %p1147_p13  ;;  %p1168_p4 = por %p1167_p6, %p1166_p2 }
  0x22   : > { %p1162_p1 = pneg %p1161_p10 }
  0x24   : > { %p1169_p8 = pnand %p1168_p4, %p1162_p1 }
  0x26   : > { %1172 = shalt.err (!%p1169_p8)
}
  0x27   : > { %s1276_s8 = smov 128   ;;  %s1277_s9 = smov 8  }
  0x28   : > { %1093 = dma.hbm_to_vmem [thread:$0]  (!%p1355_p11), %s1544_s1, 12544, %s1348_s22, [#allocation6], %s1276_s8, %s1276_s8, %s1277_s9  }
  0x29   : > { %p25_p2 = scmp.eq.s32.totalorder %s24_s26, 0  ;;  %p34_p1 = scmp.ne.s32.totalorder %s1269_s14, %s1265_s13 }
  0x2a   : > { %p35_p4 = scmp.eq.s32.totalorder %s1273_s15, 0  ;;  %p1103_p6 = scmp.lt.s32.totalorder %s1273_s15, 2 }
  0x2b   : > { %s1391_s17 = scalar_select %p25_p2, %s1269_s14, %s27_s25  }
  0x2c   : > { %p36_p8 = por %p35_p4, %p34_p1  ;;  %p1554_p10 = scmp.eq.s32.totalorder %s1325_s16, 1 }
  0x2d   : > { %s148_s27 = sand.u32 1, %s1269_s14   ;;  %s1080_s28 = smul.u32 3584, %s1273_s15 }
  0x2e   : > { %p1395_p12 = por %p1554_p10, %p34_p1  ;;  %s1079_s29 = smul.u32 224, %s148_s27 }
  0x2f   : > { %s1404_s4 = scalar_lea.hbm %s1543_s0, %s1080_s28  ;;  %p1406_p11 = pnand %p1103_p6, %p36_p8 }
  0x30   : > { %s152_s25 = scalar_lea.vmem [#allocation2], %s1079_s29  ;;  %s1412_s5 = scalar_lea.sflag [#allocation3], %s148_s27 }
  0x31   : > { %s160_s26 = sshll.u32 %s152_s25, 4  ;;  %s1173_s6 = scalar_lea.hbm %s1404_s4, 3584  ;;  %s1410_s26 = int_to_ptr.vmem [resolvable:$true] %s160_s26 }
  0x32   : > { %p1174_p13 = scmp.ne.s32.totalorder %s1404_s4, %s1173_s6  ;;  %p1175_p0 = pneg %p1406_p11 }
  0x33   : > { %s1178_s9 = scalar_lea.hbm %s1543_s0, 7168  ;;  %p1179_p7 = scmp.lt.u32.totalorder %s1404_s4, %s1543_s0 }
  0x34   : > { %p1176_p3 = pnand %p1175_p0, %p1174_p13  ;;  %p1180_p9 = scmp.lt.u32.totalorder %s1178_s9, %s1173_s6 }
  0x35   : > { %p1182_p1 = scmp.lt.u32.totalorder %s1173_s6, %s1404_s4 }
  0x36   : > { %p1177_p5 = pneg %p1176_p3  ;;  %p1181_p2 = por %p1180_p9, %p1179_p7 }
  0x38   : > { %p1183_p4 = por %p1182_p1, %p1181_p2 }
  0x3a   : > { %p1184_p6 = pnand %p1183_p4, %p1177_p5 }
  0x3c   : > { %1187 = shalt.err (!%p1184_p6)
}
  0x3d   : > { %s1188_s27 = scalar_lea.vmem %s1410_s26, 3584  ;;  %s1278_s28 = smov [#allocation2]  }
  0x3e   : > { %p1189_p8 = scmp.ne.s32.totalorder %s1410_s26, %s1188_s27  ;;  %s1193_s29 = sshll.u32 %s1278_s28, 4  ;;  %s1194_s29 = int_to_ptr.vmem [resolvable:$false] %s1193_s29 }
  0x3f   : > { %s1195_s23 = scalar_lea.vmem %s1194_s29, 7168  ;;  %p1196_p3 = scmp.lt.s32.totalorder %s1410_s26, %s1194_s29 }
  0x40   : > { %p1191_p10 = pnand %p1189_p8, %p1175_p0  ;;  %p1197_p7 = scmp.lt.s32.totalorder %s1195_s23, %s1188_s27 }
  0x42   : > { %p1192_p13 = pneg %p1191_p10  ;;  %p1198_p9 = por %p1197_p7, %p1196_p3 }
  0x44   : > { %p1199_p2 = pnand %p1198_p9, %p1192_p13 }
  0x46   : > { %1202 = shalt.err (!%p1199_p2)
}
  0x47   : > { %s1279_s30 = smov 896   ;;  %s1280_s25 = smov 56  }
  0x48   : > { %1097 = dma.hbm_to_vmem [thread:$0]  (!%p1406_p11), %s1404_s4, 3584, %s1410_s26, %s1412_s5, %s1279_s30, %s1279_s30, %s1280_s25  }
  0x49   : > { %p1557_p0 = scmp.ne.s32.totalorder %s1552_s20, 0 }
  0x4a   : > { %s1443_s6 = sand.u32 (!%p1557_p0), 1, %s1265_s13   ;;  %p1558_p5 = scmp.ne.s32.totalorder (!%p1557_p0), %s1550_s18, 0 }
  0x4b   : > { %172 = sbr.rel (%p1557_p0) target bundleno = 396 (0x18c), region = 32  ;;  %s175_s8 = scalar_lea.sflag (!%p1557_p0), [#allocation3], %s1443_s6 }
  0x4c   : > { %s1081_s7 = smul.u32 (!%p1557_p0), 224, %s1443_s6 }
  0x4e   : > { %s1447_s9 = scalar_lea.vmem (!%p1557_p0), [#allocation2], %s1081_s7 }
  0x52   : > { %1248 = dma.done.wait (%p1558_p5), %s175_s8, 3584  }
  0x53   : > { %1250 = vsyncadd (%p1558_p5), %s175_s8, 4294963712  ;;  %p1559_p11 = scmp.eq.s32.totalorder %s1325_s16, 0 }
  0x55   : > { %1252 = dma.done.wait (%p1559_p11), [#allocation6], 12544   ;;  %p1560_p1 = pmov %p1559_p11 }
  0x56   : > { %v251_v0 = vld [vmem:[#allocation5 + $0x80] sm:$0xff]  ;;  %v252_v1 = vld [vmem:[#allocation5 + $0x88] sm:$0xff]  ;;  %v253_v11 = vld [vmem:[#allocation5 + $0x90] sm:$0xff]  ;;  %vm340_vm0 = vcmask 130048   ;;  %s803_s4 = sshll.u32 %s1443_s6, 5  ;;  %s814_s5 = sshll.u32 %s1325_s16, 9 }
  0x57   : > { %1254 = vsyncadd (%p1560_p1), [#allocation6], 4294954752  ;;  %v283_v2 = vld [vmem:[#allocation5 + $0x180] sm:$0xff]  ;;  %v963_v3 = vpack.c.bf16 %v252_v1, %v251_v0  ;;  %v284_v4 = vld [vmem:[#allocation5 + $0x188] sm:$0xff]  ;;  %s204_s22 = scalar_lea.vmem [#allocation7], %s803_s4  ;;  %s1499_s27 = scalar_lea.hbm %s1546_s3, %s814_s5 }
  0x58   : > { %v235_v5 = vld [vmem:[#allocation5] sm:$0xff]  ;;  %v236_v6 = vld [vmem:[#allocation5 + $0x8] sm:$0xff]  ;;  %v995_v7 = vpack.c.bf16 %v284_v4, %v283_v2  ;;  %v254_v13 = vld [vmem:[#allocation5 + $0x98] sm:$0xff]  ;;  %s711_s26 = sshll.u32 %s204_s22, 4  ;;  %s698_s28 = scalar_lea.sflag [#allocation4], %s1443_s6  ;;  %s1494_s26 = int_to_ptr.vmem [resolvable:$true] %s711_s26 }
  0x59   : > { %v965_v8 = vpack.c.bf16 %v236_v6, %v235_v5  ;;  %v267_v9 = vld [vmem:[#allocation5 + $0x100] sm:$0xff]  ;;  %v268_v10 = vld [vmem:[#allocation5 + $0x108] sm:$0xff]  ;;  %964 = vmatprep.subr.bf16.mxu0 %v963_v3  ;;  %v285_v14 = vld [vmem:[#allocation5 + $0x190] sm:$0xff]  ;;  %v967_v16 = vpack.c.bf16 %v254_v13, %v253_v11  ;;  %s1203_s29 = scalar_lea.vmem %s1494_s26, 512  ;;  %s1281_s16 = smov [#allocation7]  }
  0x5a   : > { %v997_v12 = vpack.c.bf16 %v268_v10, %v267_v9  ;;  %v286_v15 = vld [vmem:[#allocation5 + $0x198] sm:$0xff]  ;;  %996 = vmatprep.subr.bf16.mxu1 %v995_v7  ;;  %v237_v18 = vld [vmem:[#allocation5 + $0x10] sm:$0xff]  ;;  %v255_v23 = vld [vmem:[#allocation5 + $0xa0] sm:$0xff]  ;;  %p1204_p4 = scmp.ne.s32.totalorder %s1494_s26, %s1203_s29  ;;  %s1207_s23 = sshll.u32 %s1281_s16, 4  ;;  %s1208_s23 = int_to_ptr.vmem [resolvable:$false] %s1207_s23 }
  0x5b   : > { %966 = vmatpush3.bf16.msra.mxu0 %v965_v8  ;;  %v999_v17 = vpack.c.bf16 %v286_v15, %v285_v14  ;;  %v238_v19 = vld [vmem:[#allocation5 + $0x18] sm:$0xff]  ;;  %v269_v20 = vld [vmem:[#allocation5 + $0x110] sm:$0xff]  ;;  %v256_v24 = vld [vmem:[#allocation5 + $0xa8] sm:$0xff]  ;;  %s1209_s30 = scalar_lea.vmem %s1208_s23, 1024  ;;  %p1210_p10 = scmp.lt.s32.totalorder %s1494_s26, %s1208_s23 }
  0x5c   : > { %998 = vmatpush3.bf16.msra.mxu1 %v997_v12  ;;  %v969_v21 = vpack.c.bf16 %v238_v19, %v237_v18  ;;  %v270_v22 = vld [vmem:[#allocation5 + $0x118] sm:$0xff]  ;;  %968 = vmatprep.subr.bf16.mxu0 %v967_v16  ;;  %v971_v26 = vpack.c.bf16 %v256_v24, %v255_v23  ;;  %v287_v27 = vld [vmem:[#allocation5 + $0x1a0] sm:$0xff]  ;;  %v288_v28 = vld [vmem:[#allocation5 + $0x1a8] sm:$0xff]  ;;  %p1205_p6 = pnand %p1204_p4, %p1395_p12  ;;  %p1211_p13 = scmp.lt.s32.totalorder %s1209_s30, %s1203_s29 }
  0x5d   : > { %1000 = vmatprep.subr.bf16.mxu1 %v999_v17  ;;  %v1001_v25 = vpack.c.bf16 %v270_v22, %v269_v20  ;;  %v239_v29 = vld [vmem:[#allocation5 + $0x20] sm:$0xff]  ;;  %v1003_v30 = vpack.c.bf16 %v288_v28, %v287_v27  ;;  %v240_v31 = vld [vmem:[#allocation5 + $0x28] sm:$0xff]  ;;  %v257_v35 = vld [vmem:[#allocation5 + $0xb0] sm:$0xff] }
  0x5e   : > { %v271_v32 = vld [vmem:[#allocation5 + $0x120] sm:$0xff]  ;;  %v272_v33 = vld [vmem:[#allocation5 + $0x128] sm:$0xff]  ;;  %v973_v34 = vpack.c.bf16 %v240_v31, %v239_v29  ;;  %v258_v36 = vld [vmem:[#allocation5 + $0xb8] sm:$0xff]  ;;  %p1206_p8 = pneg %p1205_p6  ;;  %p1212_p3 = por %p1211_p13, %p1210_p10 }
  0x5f   : > { %970 = vmatpush3.bf16.msra.mxu0 %v969_v21  ;;  %v289_v37 = vld [vmem:[#allocation5 + $0x1b0] sm:$0xff]  ;;  %v1005_v38 = vpack.c.bf16 %v272_v33, %v271_v32  ;;  %v975_v39 = vpack.c.bf16 %v258_v36, %v257_v35  ;;  %v290_v40 = vld [vmem:[#allocation5 + $0x1b8] sm:$0xff]  ;;  %v259_v46 = vld [vmem:[#allocation5 + $0xc0] sm:$0xff] }
  0x60   : > { %1002 = vmatpush3.bf16.msra.mxu1 %v1001_v25  ;;  %972 = vmatprep.subr.bf16.mxu0 %v971_v26  ;;  %v241_v41 = vld [vmem:[#allocation5 + $0x30] sm:$0xff]  ;;  %v242_v42 = vld [vmem:[#allocation5 + $0x38] sm:$0xff]  ;;  %v1007_v43 = vpack.c.bf16 %v290_v40, %v289_v37  ;;  %v260_v47 = vld [vmem:[#allocation5 + $0xc8] sm:$0xff]  ;;  %p1213_p7 = pnand %p1212_p3, %p1206_p8 }
  0x61   : > { %1004 = vmatprep.subr.bf16.mxu1 %v1003_v30  ;;  %v273_v44 = vld [vmem:[#allocation5 + $0x130] sm:$0xff]  ;;  %v274_v45 = vld [vmem:[#allocation5 + $0x138] sm:$0xff]  ;;  %v291_v48 = vld [vmem:[#allocation5 + $0x1c0] sm:$0xff]  ;;  %v977_v50 = vpack.c.bf16 %v242_v42, %v241_v41  ;;  %v979_v52 = vpack.c.bf16 %v260_v47, %v259_v46 }
  0x62   : > { %v292_v49 = vld [vmem:[#allocation5 + $0x1c8] sm:$0xff]  ;;  %v1009_v51 = vpack.c.bf16 %v274_v45, %v273_v44  ;;  %v243_v53 = vld [vmem:[#allocation5 + $0x40] sm:$0xff]  ;;  %v261_v58 = vld [vmem:[#allocation5 + $0xd0] sm:$0xff] }
  0x63   : > { %974 = vmatpush3.bf16.msra.mxu0 %v973_v34  ;;  %v244_v54 = vld [vmem:[#allocation5 + $0x48] sm:$0xff]  ;;  %v275_v55 = vld [vmem:[#allocation5 + $0x140] sm:$0xff]  ;;  %v1011_v56 = vpack.c.bf16 %v292_v49, %v291_v48  ;;  %v262_v59 = vld [vmem:[#allocation5 + $0xd8] sm:$0xff] }
  0x64   : > { %1006 = vmatpush3.bf16.msra.mxu1 %v1005_v38  ;;  %976 = vmatprep.subr.bf16.mxu0 %v975_v39  ;;  %v276_v57 = vld [vmem:[#allocation5 + $0x148] sm:$0xff]  ;;  %v293_v60 = vld [vmem:[#allocation5 + $0x1d0] sm:$0xff]  ;;  %v294_v61 = vld [vmem:[#allocation5 + $0x1d8] sm:$0xff]  ;;  %v981_v62 = vpack.c.bf16 %v244_v54, %v243_v53  ;;  %v983_v0 = vpack.c.bf16 %v262_v59, %v261_v58 }
  0x65   : > { %1008 = vmatprep.subr.bf16.mxu1 %v1007_v43  ;;  %v1013_v63 = vpack.c.bf16 %v276_v57, %v275_v55  ;;  %v245_v1 = vld [vmem:[#allocation5 + $0x50] sm:$0xff]  ;;  %v246_v2 = vld [vmem:[#allocation5 + $0x58] sm:$0xff]  ;;  %v1015_v4 = vpack.c.bf16 %v294_v61, %v293_v60  ;;  %v263_v6 = vld [vmem:[#allocation5 + $0xe0] sm:$0xff] }
  0x66   : > { %v277_v3 = vld [vmem:[#allocation5 + $0x150] sm:$0xff]  ;;  %v278_v5 = vld [vmem:[#allocation5 + $0x158] sm:$0xff]  ;;  %v264_v7 = vld [vmem:[#allocation5 + $0xe8] sm:$0xff]  ;;  %v985_v10 = vpack.c.bf16 %v246_v2, %v245_v1 }
  0x67   : > { %978 = vmatpush3.bf16.msra.mxu0 %v977_v50  ;;  %v295_v8 = vld [vmem:[#allocation5 + $0x1e0] sm:$0xff]  ;;  %v296_v9 = vld [vmem:[#allocation5 + $0x1e8] sm:$0xff]  ;;  %v1017_v13 = vpack.c.bf16 %v278_v5, %v277_v3  ;;  %v987_v14 = vpack.c.bf16 %v264_v7, %v263_v6  ;;  %v265_v19 = vld [vmem:[#allocation5 + $0xf0] sm:$0xff] }
  0x68   : > { %1010 = vmatpush3.bf16.msra.mxu1 %v1009_v51  ;;  %980 = vmatprep.subr.bf16.mxu0 %v979_v52  ;;  %v247_v11 = vld [vmem:[#allocation5 + $0x60] sm:$0xff]  ;;  %v248_v12 = vld [vmem:[#allocation5 + $0x68] sm:$0xff]  ;;  %v1019_v18 = vpack.c.bf16 %v296_v9, %v295_v8  ;;  %v266_v20 = vld [vmem:[#allocation5 + $0xf8] sm:$0xff] }
  0x69   : > { %1012 = vmatprep.subr.bf16.mxu1 %v1011_v56  ;;  %v279_v15 = vld [vmem:[#allocation5 + $0x160] sm:$0xff]  ;;  %v280_v16 = vld [vmem:[#allocation5 + $0x168] sm:$0xff]  ;;  %v210_v21 = vld [vmem:[%s1447_s9 + $0x18] sm:$0xff]  ;;  %v989_v24 = vpack.c.bf16 %v248_v12, %v247_v11  ;;  %v991_v26 = vpack.c.bf16 %v266_v20, %v265_v19 }
  0x6a   : > { %v208_v17 = vld [vmem:[%s1447_s9 + $0x8] sm:$0xff]  ;;  %v297_v22 = vld [vmem:[#allocation5 + $0x1f0] sm:$0xff]  ;;  %v298_v23 = vld [vmem:[#allocation5 + $0x1f8] sm:$0xff]  ;;  %502 = vmatprep.mubr.f32.mxu1 %v210_v21  ;;  %v1021_v25 = vpack.c.bf16 %v280_v16, %v279_v15 }
  0x6b   : > { %982 = vmatpush3.bf16.msra.mxu0 %v981_v62  ;;  %417 = vmatprep.mubr.f32.mxu0 %v208_v17  ;;  %v249_v27 = vld [vmem:[#allocation5 + $0x70] sm:$0xff]  ;;  %v250_v28 = vld [vmem:[#allocation5 + $0x78] sm:$0xff]  ;;  %v1023_v30 = vpack.c.bf16 %v298_v23, %v297_v22  ;;  %v315_v32 = vld [vmem:[#allocation5 + $0x280] sm:$0xff] }
  0x6c   : > { %1014 = vmatpush3.bf16.msra.mxu1 %v1013_v63  ;;  %984 = vmatprep.subr.bf16.mxu0 %v983_v0  ;;  %v281_v29 = vld [vmem:[#allocation5 + $0x170] sm:$0xff]  ;;  %v282_v31 = vld [vmem:[#allocation5 + $0x178] sm:$0xff]  ;;  %v316_v33 = vld [vmem:[#allocation5 + $0x288] sm:$0xff]  ;;  %v993_v34 = vpack.c.bf16 %v250_v28, %v249_v27 }
  0x6d   : > { %1016 = vmatprep.subr.bf16.mxu1 %v1015_v4  ;;  %v1025_v35 = vpack.c.bf16 %v282_v31, %v281_v29  ;;  %v1027_v36 = vpack.c.bf16 %v316_v33, %v315_v32  ;;  %v299_v37 = vld [vmem:[#allocation5 + $0x200] sm:$0xff]  ;;  %v300_v38 = vld [vmem:[#allocation5 + $0x208] sm:$0xff]  ;;  %v317_v39 = vld [vmem:[#allocation5 + $0x290] sm:$0xff] }
  0x6e   : > { %v318_v40 = vld [vmem:[#allocation5 + $0x298] sm:$0xff]  ;;  %v207_v41 = vld [vmem:[%s1447_s9] sm:$0xff]  ;;  %v1029_v42 = vpack.c.bf16 %v300_v38, %v299_v37  ;;  %v209_v43 = vld [vmem:[%s1447_s9 + $0x10] sm:$0xff] }
  0x6f   : > { %986 = vmatpush3.bf16.msra.mxu0 %v985_v10  ;;  %v1031_v44 = vpack.c.bf16 %v318_v40, %v317_v39  ;;  %v301_v45 = vld [vmem:[#allocation5 + $0x210] sm:$0xff]  ;;  %v302_v46 = vld [vmem:[#allocation5 + $0x218] sm:$0xff]  ;;  %v319_v47 = vld [vmem:[#allocation5 + $0x2a0] sm:$0xff] }
  0x70   : > { %1018 = vmatpush3.bf16.msra.mxu1 %v1017_v13  ;;  %988 = vmatprep.subr.bf16.mxu0 %v987_v14  ;;  %v320_v48 = vld [vmem:[#allocation5 + $0x2a8] sm:$0xff]  ;;  %v215_v49 = vld [vmem:[%s1447_s9 + $0x40] sm:$0xff]  ;;  %v1033_v50 = vpack.c.bf16 %v302_v46, %v301_v45  ;;  %v214_v51 = vld [vmem:[%s1447_s9 + $0x38] sm:$0xff] }
  0x71   : > { %1020 = vmatprep.subr.bf16.mxu1 %v1019_v18  ;;  %v217_v52 = vld [vmem:[%s1447_s9 + $0x50] sm:$0xff]  ;;  %v1035_v53 = vpack.c.bf16 %v320_v48, %v319_v47  ;;  %v303_v54 = vld [vmem:[#allocation5 + $0x220] sm:$0xff]  ;;  %v304_v55 = vld [vmem:[#allocation5 + $0x228] sm:$0xff] }
  0x72   : > { %v216_v56 = vld [vmem:[%s1447_s9 + $0x48] sm:$0xff]  ;;  %v321_v57 = vld [vmem:[#allocation5 + $0x2b0] sm:$0xff]  ;;  %v322_v58 = vld [vmem:[#allocation5 + $0x2b8] sm:$0xff]  ;;  %v1037_v60 = vpack.c.bf16 %v304_v55, %v303_v54 }
  0x73   : > { %990 = vmatpush3.bf16.msra.mxu0 %v989_v24  ;;  %v222_v59 = vld [vmem:[%s1447_s9 + $0x78] sm:$0xff]  ;;  %v221_v61 = vld [vmem:[%s1447_s9 + $0x70] sm:$0xff]  ;;  %v224_v62 = vld [vmem:[%s1447_s9 + $0x88] sm:$0xff]  ;;  %v1039_v63 = vpack.c.bf16 %v322_v58, %v321_v57 }
  0x74   : > { %1022 = vmatpush3.bf16.msra.mxu1 %v1021_v25  ;;  %992 = vmatprep.subr.bf16.mxu0 %v991_v26  ;;  %v305_v0 = vld [vmem:[#allocation5 + $0x230] sm:$0xff]  ;;  %v306_v1 = vld [vmem:[#allocation5 + $0x238] sm:$0xff]  ;;  %v223_v2 = vld [vmem:[%s1447_s9 + $0x80] sm:$0xff] }
  0x75   : > { %1024 = vmatprep.subr.bf16.mxu1 %v1023_v30  ;;  %v323_v3 = vld [vmem:[#allocation5 + $0x2c0] sm:$0xff]  ;;  %v324_v4 = vld [vmem:[#allocation5 + $0x2c8] sm:$0xff]  ;;  %v229_v5 = vld [vmem:[%s1447_s9 + $0xb0] sm:$0xff]  ;;  %v1041_v6 = vpack.c.bf16 %v306_v1, %v305_v0 }
  0x76   : > { %v228_v7 = vld [vmem:[%s1447_s9 + $0xa8] sm:$0xff]  ;;  %v231_v8 = vld [vmem:[%s1447_s9 + $0xc0] sm:$0xff]  ;;  %v1043_v9 = vpack.c.bf16 %v324_v4, %v323_v3  ;;  %v230_v12 = vld [vmem:[%s1447_s9 + $0xb8] sm:$0xff] }
  0x77   : > { %994 = vmatpush3.bf16.msra.mxu0 %v993_v34  ;;  %v307_v10 = vld [vmem:[#allocation5 + $0x240] sm:$0xff]  ;;  %v308_v11 = vld [vmem:[#allocation5 + $0x248] sm:$0xff]  ;;  %v325_v13 = vld [vmem:[#allocation5 + $0x2d0] sm:$0xff] }
  0x78   : > { %1026 = vmatpush3.bf16.msra.mxu1 %v1025_v35  ;;  %1028 = vmatprep.subr.bf16.mxu0 %v1027_v36  ;;  %v326_v14 = vld [vmem:[#allocation5 + $0x2d8] sm:$0xff]  ;;  %v212_v15 = vld [vmem:[%s1447_s9 + $0x28] sm:$0xff]  ;;  %v1045_v16 = vpack.c.bf16 %v308_v11, %v307_v10  ;;  %v233_v17 = vld [vmem:[%s1447_s9 + $0xd0] sm:$0xff] }
  0x79   : > { %1063 = vmatprep.subr.bf16.mxu1 %v1027_v36  ;;  %v1047_v18 = vpack.c.bf16 %v326_v14, %v325_v13  ;;  %v309_v19 = vld [vmem:[#allocation5 + $0x250] sm:$0xff]  ;;  %v310_v20 = vld [vmem:[#allocation5 + $0x258] sm:$0xff]  ;;  %v327_v21 = vld [vmem:[#allocation5 + $0x2e0] sm:$0xff] }
  0x7a   : > { %418 = vmatmul.mubr.f32.vlgmr.msra.gmra.mrb[0].mxu0 %v207_v41  ;;  %v328_v22 = vld [vmem:[#allocation5 + $0x2e8] sm:$0xff]  ;;  %v1049_v23 = vpack.c.bf16 %v310_v20, %v309_v19  ;;  %v311_v25 = vld [vmem:[#allocation5 + $0x260] sm:$0xff]  ;;  %v329_v27 = vld [vmem:[#allocation5 + $0x2f0] sm:$0xff] }
  0x7b   : > { %503 = vmatmul.mubr.f32.vlgmr.msra.gmra.mrb[0].mxu1 %v209_v43  ;;  %1030 = vmatpush3.bf16.msra.mxu0 %v1029_v42  ;;  %v1051_v24 = vpack.c.bf16 %v328_v22, %v327_v21  ;;  %v312_v26 = vld [vmem:[#allocation5 + $0x268] sm:$0xff]  ;;  %v330_v28 = vld [vmem:[#allocation5 + $0x2f8] sm:$0xff]  ;;  %v313_v31 = vld [vmem:[#allocation5 + $0x270] sm:$0xff] }
  0x7c   : > { %1071 = vmatpush3.bf16.msra.mxu1 %v1029_v42  ;;  %1032 = vmatprep.subr.bf16.mxu0 %v1031_v44  ;;  %v1053_v29 = vpack.c.bf16 %v312_v26, %v311_v25  ;;  %v1055_v30 = vpack.c.bf16 %v330_v28, %v329_v27  ;;  %v314_v32 = vld [vmem:[#allocation5 + $0x278] sm:$0xff]  ;;  %v331_v33 = vld [vmem:[#allocation5 + $0x300] sm:$0xff]  ;;  %v332_v34 = vld [vmem:[#allocation5 + $0x308] sm:$0xff] }
  0x7d   : > { %1064 = vmatprep.subr.bf16.mxu1 %v1031_v44  ;;  %422 = vmatprep.mubr.f32.mxu0 %v215_v49  ;;  %v1057_v35 = vpack.c.bf16 %v314_v32, %v313_v31  ;;  %v1059_v36 = vpack.c.bf16 %v332_v34, %v331_v33  ;;  %v211_v37 = vld [vmem:[%s1447_s9 + $0x20] sm:$0xff]  ;;  %v232_v38 = vld [vmem:[%s1447_s9 + $0xc8] sm:$0xff]  ;;  %v213_v40 = vld [vmem:[%s1447_s9 + $0x30] sm:$0xff] }
  0x7e   : > { %423 = vmatmul.mubr.f32.gmra.mrb[2].mxu0 %v214_v51  ;;  %507 = vmatprep.mubr.f32.mxu1 %v217_v52  ;;  %v219_v39 = vld [vmem:[%s1447_s9 + $0x60] sm:$0xff]  ;;  %v218_v41 = vld [vmem:[%s1447_s9 + $0x58] sm:$0xff]  ;;  %v220_v42 = vld [vmem:[%s1447_s9 + $0x68] sm:$0xff] }
  0x7f   : > { %1034 = vmatpush3.bf16.msra.mxu0 %v1033_v50  ;;  %508 = vmatmul.mubr.f32.gmra.mrb[2].mxu1 %v216_v56  ;;  %v226_v43 = vld [vmem:[%s1447_s9 + $0x98] sm:$0xff]  ;;  %v227_v44 = vld [vmem:[%s1447_s9 + $0xa0] sm:$0xff]  ;;  %v225_v45 = vld [vmem:[%s1447_s9 + $0x90] sm:$0xff] }
  0x80   : > { %1072 = vmatpush3.bf16.msra.mxu1 %v1033_v50  ;;  %1036 = vmatprep.subr.bf16.mxu0 %v1035_v53  ;;  %v234_v46 = vld [vmem:[%s1447_s9 + $0xd8] sm:$0xff]  ;;  %v804_v48 = vld [vmem:[%s1545_s2] ss:$0 sm:$0xff] }
  0x81   : > { %1065 = vmatprep.subr.bf16.mxu1 %v1035_v53  ;;  %427 = vmatprep.mubr.f32.mxu0 %v222_v59 }
  0x82   : > { %428 = vmatmul.mubr.f32.gmra.mrb[4].mxu0 %v221_v61  ;;  %512 = vmatprep.mubr.f32.mxu1 %v224_v62 }
  0x83   : > { %1038 = vmatpush3.bf16.msra.mxu0 %v1037_v60  ;;  %513 = vmatmul.mubr.f32.gmra.mrb[4].mxu1 %v223_v2 }
  0x84   : > { %1073 = vmatpush3.bf16.msra.mxu1 %v1037_v60  ;;  %1040 = vmatprep.subr.bf16.mxu0 %v1039_v63 }
  0x85   : > { %1066 = vmatprep.subr.bf16.mxu1 %v1039_v63  ;;  %432 = vmatprep.mubr.f32.mxu0 %v229_v5 }
  0x86   : > { %433 = vmatmul.mubr.f32.gmra.mrb[6].mxu0 %v228_v7  ;;  %517 = vmatprep.mubr.f32.mxu1 %v231_v8 }
  0x87   : > { %1042 = vmatpush3.bf16.msra.mxu0 %v1041_v6  ;;  %518 = vmatmul.mubr.f32.gmra.mrb[6].mxu1 %v230_v12 }
  0x88   : > { %1074 = vmatpush3.bf16.msra.mxu1 %v1041_v6  ;;  %1044 = vmatprep.subr.bf16.mxu0 %v1043_v9 }
  0x89   : > { %1067 = vmatprep.subr.bf16.mxu1 %v1043_v9  ;;  %587 = vmatprep.mubr.f32.mxu0 %v212_v15 }
  0x8a   : > { %602 = vmatprep.mubr.f32.mxu1 %v233_v17 }
  0x8b   : > { %1046 = vmatpush3.bf16.msra.mxu0 %v1045_v16 }
  0x8c   : > { %1075 = vmatpush3.bf16.msra.mxu1 %v1045_v16  ;;  %1048 = vmatprep.subr.bf16.mxu0 %v1047_v18 }
  0x8d   : > { %1068 = vmatprep.subr.bf16.mxu1 %v1047_v18 }
  0x8f   : > { %1050 = vmatpush3.bf16.msra.mxu0 %v1049_v23 }
  0x90   : > { %1076 = vmatpush3.bf16.msra.mxu1 %v1049_v23  ;;  %1052 = vmatprep.subr.bf16.mxu0 %v1051_v24 }
  0x91   : > { %1069 = vmatprep.subr.bf16.mxu1 %v1051_v24 }
  0x93   : > { %1054 = vmatpush3.bf16.msra.mxu0 %v1053_v29 }
  0x94   : > { %1077 = vmatpush3.bf16.msra.mxu1 %v1053_v29  ;;  %1056 = vmatprep.subr.bf16.mxu0 %v1055_v30 }
  0x95   : > { %1070 = vmatprep.subr.bf16.mxu1 %v1055_v30 }
  0x97   : > { %1058 = vmatpush3.bf16.msra.mxu0 %v1057_v35 }
  0x98   : > { %1078 = vmatpush3.bf16.msra.mxu1 %v1057_v35 }
  0x99   : > { %1060 = vmatprep.subr.bf16.mxu1 %v1059_v36 }
  0x9a   : > { %588 = vmatmul.mubr.f32.vlgmr.msra.gmra.mrb[8].mxu0 %v211_v37 }
  0x9b   : > { %603 = vmatmul.mubr.f32.vlgmr.msra.gmra.mrb[8].mxu1 %v232_v38  ;;  %592 = vmatprep.mubr.f32.mxu0 %v219_v39 }
  0x9c   : > { %1062 = vmatpush3.bf16.msra.mxu1 %v1059_v36  ;;  %957 = vmatprep.mubr.msk.f32.mxu1 %vm340_vm0, %v213_v40 }
  0x9e   : > { %593 = vmatmul.mubr.f32.gmra.mrb[10].mxu0 %v218_v41 }
  0x9f   : > { %958 = vmatmul.mubr.msk.f32.vlgmr.msra.gmra.mrb[10].mxu1 %vm340_vm0, %v220_v42  ;;  %597 = vmatprep.mubr.f32.mxu0 %v226_v43 }
  0xa0   : > { %960 = vmatprep.mubr.msk.f32.mxu1 %vm340_vm0, %v227_v44 }
  0xa2   : > { %598 = vmatmul.mubr.f32.gmra.mrb[12].mxu0 %v225_v45 }
  0xa3   : > { %961 = vmatmul.mubr.msk.f32.gmra.mrb[12].mxu1 %vm340_vm0, %v234_v46 }
 0x14d   : > { %v847_v47 = vpop.f32.mrb[0].mxu0 }
 0x14e   : > { %v848_v49 = vpop.f32.mrb[1].mxu0  ;;  %v891_v50 = vpop.f32.mrb[0].mxu1 }
 0x14f   : > { %v849_v51 = vadd.f32 %v848_v49, %v847_v47  ;;  %v892_v52 = vpop.f32.mrb[1].mxu1 }
 0x150   : > { %v893_v53 = vadd.f32 %v892_v52, %v891_v50 }
 0x151   : > { %v420_v54 = vadd.f32 %v849_v51, %v804_v48  ;;  %v850_v55 = vpop.f32.mrb[2].mxu0 }
 0x152   : > { %v851_v56 = vpop.f32.mrb[3].mxu0  ;;  %v894_v57 = vpop.f32.mrb[2].mxu1 }
 0x153   : > { %v505_v58 = vadd.f32 %v893_v53, %v420_v54  ;;  %v852_v59 = vadd.f32 %v851_v56, %v850_v55  ;;  %v895_v60 = vpop.f32.mrb[3].mxu1 }
 0x154   : > { %v896_v61 = vadd.f32 %v895_v60, %v894_v57 }
 0x155   : > { %v425_v62 = vadd.f32 %v852_v59, %v804_v48  ;;  %v853_v63 = vpop.f32.mrb[4].mxu0 }
 0x156   : > { %v854_v0 = vpop.f32.mrb[5].mxu0  ;;  %v897_v1 = vpop.f32.mrb[4].mxu1 }
 0x157   : > { %v510_v2 = vadd.f32 %v896_v61, %v425_v62  ;;  %v855_v3 = vadd.f32 %v854_v0, %v853_v63  ;;  %v898_v4 = vpop.f32.mrb[5].mxu1 }
 0x158   : > { %v899_v5 = vadd.f32 %v898_v4, %v897_v1 }
 0x159   : > { %v430_v6 = vadd.f32 %v855_v3, %v804_v48  ;;  %v856_v7 = vpop.f32.mrb[6].mxu0 }
 0x15a   : > { %v857_v8 = vpop.f32.mrb[7].mxu0  ;;  %v900_v9 = vpop.f32.mrb[6].mxu1 }
 0x15b   : > { %v515_v10 = vadd.f32 %v899_v5, %v430_v6  ;;  %v858_v11 = vadd.f32 %v857_v8, %v856_v7  ;;  %v901_v12 = vpop.f32.mrb[7].mxu1 }
 0x15c   : > { %v902_v13 = vadd.f32 %v901_v12, %v900_v9 }
 0x15d   : > { %v435_v14 = vadd.f32 %v858_v11, %v804_v48 }
 0x15f   : > { %v520_v15 = vadd.f32 %v902_v13, %v435_v14 }
 0x16d   : > { %v935_v16 = vpop.f32.mrb[8].mxu0 }
 0x16e   : > { %v944_v17 = vpop.f32.mrb[8].mxu1  ;;  %v936_v18 = vpop.f32.mrb[9].mxu0 }
 0x16f   : > { %v937_v19 = vadd.f32 %v936_v18, %v935_v16  ;;  %v945_v20 = vpop.f32.mrb[9].mxu1 }
 0x170   : > { %v946_v21 = vadd.f32 %v945_v20, %v944_v17 }
 0x171   : > { %v938_v22 = vpop.f32.mrb[10].mxu0  ;;  %v590_v23 = vadd.f32 %v937_v19, %v505_v58 }
 0x172   : > { %v959_v24 = vpop.f32.mrb[10].mxu1  ;;  %v939_v25 = vpop.f32.mrb[11].mxu0  ;;  %v605_v26 = vadd.f32 %v946_v21, %v520_v15 }
 0x173   : > { %v940_v27 = vadd.f32 %v939_v25, %v938_v22  ;;  %v674_v28 = vpop.f32.mrb[11].mxu1 }
 0x174   : > { %v675_v29 = vadd.f32 %v674_v28, %v590_v23 }
 0x175   : > { %v595_v30 = vadd.f32 %v940_v27, %v510_v2  ;;  %v941_v31 = vpop.f32.mrb[12].mxu0 }
 0x176   : > { %693 = vst [vmem:[%s204_s22] sm:$0xff] %v675_v29  ;;  %v962_v32 = vpop.f32.mrb[12].mxu1  ;;  %v942_v33 = vpop.f32.mrb[13].mxu0 }
 0x177   : > { %v680_v34 = vadd.f32 %v959_v24, %v595_v30  ;;  %v690_v35 = vadd.f32 %v962_v32, %v605_v26  ;;  %v943_v36 = vadd.f32 %v942_v33, %v941_v31  ;;  %v684_v37 = vpop.f32.mrb[13].mxu1 }
 0x179   : > { %694 = vst [vmem:[%s204_s22 + $0x8] sm:$0xff] %v680_v34  ;;  %696 = vst [vmem:[%s204_s22 + $0x18] sm:$0xff] %v690_v35  ;;  %v600_v38 = vadd.f32 %v943_v36, %v515_v10 }
 0x17b   : > { %v685_v39 = vadd.f32 %v684_v37, %v600_v38 }
 0x17d   : > { %695 = vst [vmem:[%s204_s22 + $0x10] sm:$0xff] %v685_v39 }
 0x17e   : > { %1216 = shalt.err (!%p1213_p7)
}
 0x17f   : > { %s1217_s25 = scalar_lea.hbm %s1499_s27, 512  ;;  %s1221_s9 = scalar_lea.hbm %s1546_s3, 1024 }
 0x180   : > { %p1218_p9 = scmp.ne.s32.totalorder %s1499_s27, %s1217_s25  ;;  %p1222_p5 = scmp.lt.u32.totalorder %s1499_s27, %s1546_s3 }
 0x181   : > { %p1223_p11 = scmp.lt.u32.totalorder %s1221_s9, %s1217_s25  ;;  %p1225_p4 = scmp.lt.u32.totalorder %s1217_s25, %s1499_s27 }
 0x182   : > { %p1219_p2 = pnand %p1218_p9, %p1395_p12 }
 0x183   : > { %p1224_p1 = por %p1223_p11, %p1222_p5 }
 0x184   : > { %p1220_p0 = pneg %p1219_p2 }
 0x185   : > { %p1226_p6 = por %p1225_p4, %p1224_p1 }
 0x187   : > { %p1227_p8 = pnand %p1226_p6, %p1220_p0 }
 0x189   : > { %1230 = shalt.err (!%p1227_p8)
}
 0x18a   : > { %s1282_s4 = smov 128   ;;  %s1283_s22 = smov 8  }
 0x18b   : > { %1088 = dma.vmem_to_hbm [thread:$0]  (%p1395_p12), %s1494_s26, 512, %s1499_s27, %s698_s28, %s1282_s4, %s1282_s4, %s1283_s22  }
 0x18c PF: > { %s726_s5 = sand.u32 1, %s1261_s12   ;;  %p1561_p10 = scmp.ne.s32.totalorder %s1551_s19, 0 }
 0x18d   : > { %p1562_p13 = scmp.ge.s32.totalorder %s1273_s15, 2  ;;  %s727_s10 = scalar_lea.sflag [#allocation4], %s726_s5 }
 0x18f   : > { %p1099_p3 = pnand %p1562_p13, %p1561_p10 }
 0x191   : > { %1256 = dma.done.wait (!%p1099_p3), %s727_s10, 512  }
 0x192   : > { %1258 = vsyncadd (!%p1099_p3), %s727_s10, 4294966784  ;;  %p17_p7 = scmp.ge.s32.totalorder %s1360_s24, 4   ;;  %s1563_s12 = smov %s1265_s13 }
 0x193   : > { %s1564_s13 = smov %s1269_s14  ;;  %s1565_s14 = smov %s1391_s17 }
 0x194   : > { %s1566_s15 = smov %s1360_s24  ;;  %19 = sbr.rel (!%p17_p7) target bundleno = 6 (0x6), region = 81 }
 0x19b   :  { %732 = vsyncpa [#allocation3], 1 }
 0x19c   :  { %734 = vsyncpa [#allocation3 + $0x1], 1 }
 0x19d   :  { %735 = vsyncpa [#allocation6], 1 }
 0x19e   :  { %736 = vsyncpa [#allocation4], 1 }
 0x19f   :  { %738 = vsyncpa [#allocation4 + $0x1], 1 }

</bundles_post_ra>
